<compile_context>
chip_gen: v7x
topology: tpu7x:2x2x1
jax: 0.10.0
libtpu: 0.0.40
codegen_flags: <defaults>
</compile_context>

<pallas_src>
import math

import jax
import jax.numpy as jnp
from jax.experimental import pallas as pl
from jax.experimental.pallas import tpu as pltpu


def _posemb_fused_kernel(x_ref, emap_ref, scale_ref, phase_ref, out_ref):
    # x_ref: (tb, xcols) f32, emap_ref: (xcols, cols) f32 one-hot expansion,
    # scale_ref/phase_ref: (1, cols) f32, out_ref: (tb, cols) out_dtype.
    if x_ref.shape[1] == 1:
        # One batch element per row: plain VPU lane-broadcast against scale.
        xe = x_ref[...]
    else:
        # Expand (tb, reps) -> (tb, 128) on the otherwise-idle MXU:
        # E[j, l] = 1 iff l // dim == j, so xe[r, l] = x_small[r, l // dim].
        xe = jnp.dot(x_ref[...], emap_ref[...],
                     preferred_element_type=jnp.float32)
    # cos(theta) realised as sin(theta + pi/2): one trig pass, one full-width
    # unmasked 128-lane store per vreg row.
    out_ref[...] = jnp.sin(xe * scale_ref[...] + phase_ref[...]).astype(out_ref.dtype)


def _posemb_exact_kernel(x_ref, freqs_ref, out_ref):
    # Bit-exact fallback: x_ref (tb, 1), freqs_ref (1, half), out_ref (tb, dim).
    half = freqs_ref.shape[1]
    emb = x_ref[...] * freqs_ref[...]            # (tb, half) broadcast multiply
    out_ref[:, :half] = jnp.sin(emb).astype(out_ref.dtype)
    out_ref[:, half:] = jnp.cos(emb).astype(out_ref.dtype)


def _pick_row_tile(rows: int, row_bytes: int, block_rows: int) -> int:
    """Row tile: multiple of 8 (or full extent); ~4 MiB/output buffer cap."""
    if rows <= 8:
        return rows
    # ~4 MiB per (double-buffered) output buffer: safe on v5e (16 MiB scoped
    # default) and v7x (32 of 64 MiB); conservative for v6e's 32/128 MiB.
    cap = max(8, ((4 * 1024 * 1024) // max(row_bytes, 1)) // 8 * 8)
    tb = min(max(8, (block_rows // 8) * 8), cap, max(8, (rows // 8) * 8))
    if rows >= 16:
        # Guarantee >= 2 grid steps so v7x's two TensorCores both engage;
        # at most one extra ~0.35 us step on single-TC v5e/v6e.
        tb = min(tb, max(8, (rows // 2) // 8 * 8))
    return tb


def sinusoidal_pos_emb(x: jax.Array, dim: int, *, out_dtype=jnp.float32,
                       exact: bool = False, block_rows: int = 512) -> jax.Array:
    """Pallas equivalent of SinusoidalPosEmb(dim)(x): (B,) -> (B, dim)."""
    assert dim % 2 == 0 and dim >= 4, "dim must be even and >= 4"
    b = x.shape[0]
    half = dim // 2
    x = x.astype(jnp.float32)

    # Hoisted frequency table (trace time; never touches the kernel).
    log_scale = math.log(10000.0) / (half - 1)
    freqs = jnp.exp(jnp.arange(half, dtype=jnp.float32) * -log_scale)   # (half,)

    itemsize = jnp.dtype(out_dtype).itemsize
    cost = pl.CostEstimate(flops=2 * b * dim, transcendentals=b * dim,
                           bytes_accessed=4 * b + 4 * dim + b * dim * itemsize)
    cparams = pltpu.CompilerParams(dimension_semantics=("parallel",))

    # Auto-select the lane-dense fused path (default).  dim % 256 == 0 goes to
    # the exact path: both half-stores are already 128-lane aligned there.
    use_fused = (not exact) and (dim % 256 != 0) and (
        (dim % 128 == 0)
        or (dim <= 128 and 128 % dim == 0 and (b * dim) % 128 == 0))

    if use_fused:
        if dim % 128 == 0:
            rows, cols, xcols = b, dim, 1
            x_in = x.reshape(rows, 1)
            emap = jnp.ones((1, cols), jnp.float32)          # unused in-kernel
        else:
            xcols = 128 // dim                                # batch elems / row
            rows, cols = (b * dim) // 128, 128
            x_in = x.reshape(rows, xcols)                     # free reshape
            lane = jnp.arange(cols, dtype=jnp.int32)
            emap = (lane[None, :] // dim
                    == jnp.arange(xcols, dtype=jnp.int32)[:, None]).astype(jnp.float32)
        reps_cols = cols // dim
        scale = jnp.tile(jnp.concatenate([freqs, freqs]), reps_cols).reshape(1, cols)
        phase = jnp.tile(
            jnp.concatenate([jnp.zeros((half,), jnp.float32),
                             jnp.full((half,), 0.5 * math.pi, jnp.float32)]),
            reps_cols).reshape(1, cols)

        tb = _pick_row_tile(rows, cols * itemsize, block_rows)
        out = pl.pallas_call(
            _posemb_fused_kernel,
            out_shape=jax.ShapeDtypeStruct((rows, cols), out_dtype),
            grid=(pl.cdiv(rows, tb),),
            in_specs=[pl.BlockSpec((tb, xcols), lambda i: (i, 0)),
                      pl.BlockSpec((xcols, cols), lambda i: (0, 0)),
                      pl.BlockSpec((1, cols), lambda i: (0, 0)),
                      pl.BlockSpec((1, cols), lambda i: (0, 0))],
            out_specs=pl.BlockSpec((tb, cols), lambda i: (i, 0)),
            compiler_params=cparams,
            cost_estimate=cost,
        )(x_in, emap, scale, phase)
        return out.reshape(b, dim)        # free row-major reshape back to (B, dim)

    # Exact fallback: (B, dim) blocks, true sin/cos via two static slice stores.
    x_in = x.reshape(b, 1)
    freqs_in = freqs.reshape(1, half)
    tb = _pick_row_tile(b, dim * itemsize, block_rows)
    return pl.pallas_call(
        _posemb_exact_kernel,
        out_shape=jax.ShapeDtypeStruct((b, dim), out_dtype),
        grid=(pl.cdiv(b, tb),),
        in_specs=[pl.BlockSpec((tb, 1), lambda i: (i, 0)),
                  pl.BlockSpec((1, half), lambda i: (0, 0))],
        out_specs=pl.BlockSpec((tb, dim), lambda i: (i, 0)),
        compiler_params=cparams,
        cost_estimate=cost,
    )(x_in, freqs_in)


def _reference(x: jax.Array, dim: int) -> jax.Array:
    half = dim // 2
    scale = math.log(10000.0) / (half - 1)
    freqs = jnp.exp(jnp.arange(half, dtype=jnp.float32) * -scale)
    emb = x.astype(jnp.float32)[:, None] * freqs[None, :]
    return jnp.concatenate([jnp.sin(emb), jnp.cos(emb)], axis=-1)


if __name__ == "__main__":
    key = jax.random.PRNGKey(0)
    B, DIM = 8, 32
    # Diffusion-timestep-like input.
    x = jax.random.uniform(key, (B,), dtype=jnp.float32, minval=0.0, maxval=1000.0)
    ref = _reference(x, DIM)

    # Default (lane-dense fused) path: cos folded into sin(theta + pi/2);
    # angle-rounding error at theta ~ 1e3 is ~3e-5.
    out = jax.block_until_ready(sinusoidal_pos_emb(x, DIM))
    assert out.shape == (B, DIM), out.shape
    assert jnp.allclose(out, ref, atol=1e-3, rtol=1e-3), "fused path mismatch"

    # Bit-exact path (true cos), selectable for parity with the PyTorch module.
    out_exact = jax.block_until_ready(sinusoidal_pos_emb(x, DIM, exact=True))
    assert out_exact.shape == (B, DIM), out_exact.shape
    assert jnp.allclose(out_exact, ref, atol=1e-4, rtol=1e-4), "exact path mismatch"

    # bf16 output option (halves HBM write traffic).
    out_bf16 = jax.block_until_ready(
        sinusoidal_pos_emb(x, DIM, out_dtype=jnp.bfloat16))
    assert out_bf16.dtype == jnp.bfloat16
    assert jnp.allclose(out_bf16.astype(jnp.float32), ref, atol=2e-2, rtol=2e-2), \
        "bf16 path mismatch"

    # dim % 128 == 0 branch of the fused path (one batch element per row).
    B2, DIM2 = 4, 128
    x2 = jax.random.uniform(jax.random.PRNGKey(0), (B2,), dtype=jnp.float32,
                            minval=0.0, maxval=1000.0)
    out2 = jax.block_until_ready(sinusoidal_pos_emb(x2, DIM2))
    assert jnp.allclose(out2, _reference(x2, DIM2), atol=1e-3, rtol=1e-3), \
        "fused dim%128 path mismatch"

    # dim % 256 == 0 auto-routes to the exact, already-aligned path.
    B3, DIM3 = 6, 256
    x3 = jax.random.uniform(jax.random.PRNGKey(0), (B3,), dtype=jnp.float32,
                            minval=0.0, maxval=1000.0)
    out3 = jax.block_until_ready(sinusoidal_pos_emb(x3, DIM3))
    assert jnp.allclose(out3, _reference(x3, DIM3), atol=1e-4, rtol=1e-4), \
        "exact dim%256 path mismatch"

    print("KERNEL_OK")
</pallas_src>

<mosaic_0001>
module attributes {stable_mosaic.version = 11 : i64} {
  func.func @_posemb_fused_kernel(%arg0: i32, %arg1: memref<2x4xf32, #tpu.memory_space<vmem>>, %arg2: memref<4x128xf32, #tpu.memory_space<vmem>>, %arg3: memref<1x128xf32, #tpu.memory_space<vmem>>, %arg4: memref<1x128xf32, #tpu.memory_space<vmem>>, %arg5: memref<2x128xf32, #tpu.memory_space<vmem>>) attributes {dimension_semantics = [#tpu.dimension_semantics<parallel>], iteration_bounds = array<i64: 1>, scalar_prefetch = 0 : i64, scratch_operands = 0 : i64, tpu.core_type = #tpu.core_type<tc>, window_params = [{transform_indices = @transform_0, window_bounds = array<i64: 2, 4>}, {pipeline_mode = #tpu.pipeline_mode<synchronous>, transform_indices = @transform_1, window_bounds = array<i64: 4, 128>}, {pipeline_mode = #tpu.pipeline_mode<synchronous>, transform_indices = @transform_2, window_bounds = array<i64: 1, 128>}, {pipeline_mode = #tpu.pipeline_mode<synchronous>, transform_indices = @transform_3, window_bounds = array<i64: 1, 128>}, {transform_indices = @transform_4, window_bounds = array<i64: 2, 128>}]} {
    %c0 = arith.constant 0 : index
    %c0_0 = arith.constant 0 : index
    %0 = vector.load %arg1[%c0, %c0_0] : memref<2x4xf32, #tpu.memory_space<vmem>>, vector<2x4xf32>
    %c0_1 = arith.constant 0 : index
    %c0_2 = arith.constant 0 : index
    %1 = vector.load %arg2[%c0_1, %c0_2] : memref<4x128xf32, #tpu.memory_space<vmem>>, vector<4x128xf32>
    %cst = arith.constant dense<0.000000e+00> : vector<2x128xf32>
    %2 = tpu.matmul %0, %1, %cst {dimension_numbers = #tpu.dot_dimension_numbers<[1], [0], [0], [1], [0, 0, 1, 1], [], []>} : vector<2x4xf32>, vector<4x128xf32>, vector<2x128xf32> -> vector<2x128xf32>
    %c0_3 = arith.constant 0 : index
    %c0_4 = arith.constant 0 : index
    %3 = vector.load %arg3[%c0_3, %c0_4] : memref<1x128xf32, #tpu.memory_space<vmem>>, vector<1x128xf32>
    %4 = vector.broadcast %3 : vector<1x128xf32> to vector<2x128xf32>
    %5 = arith.mulf %2, %4 : vector<2x128xf32>
    %c0_5 = arith.constant 0 : index
    %c0_6 = arith.constant 0 : index
    %6 = vector.load %arg4[%c0_5, %c0_6] : memref<1x128xf32, #tpu.memory_space<vmem>>, vector<1x128xf32>
    %7 = vector.broadcast %6 : vector<1x128xf32> to vector<2x128xf32>
    %8 = arith.addf %5, %7 : vector<2x128xf32>
    %9 = math.sin %8 : vector<2x128xf32>
    %c0_7 = arith.constant 0 : index
    %c0_8 = arith.constant 0 : index
    %10 = vector.load %arg5[%c0_7, %c0_8] : memref<2x128xf32, #tpu.memory_space<vmem>>, vector<2x128xf32>
    tpu.vector_store %arg5[%c0_7, %c0_8], %9 {strides = array<i32>} : memref<2x128xf32, #tpu.memory_space<vmem>>, vector<2x128xf32>,
    return
  }
  func.func @transform_0(%arg0: i32) -> (i32, i32) {
    %c0_i32 = arith.constant 0 : i32
    %c0_i32_0 = arith.constant 0 : i32
    return %arg0, %c0_i32 : i32, i32
  }
  func.func @transform_1(%arg0: i32) -> (i32, i32) {
    %c0_i32 = arith.constant 0 : i32
    %c0_i32_0 = arith.constant 0 : i32
    %c0_i32_1 = arith.constant 0 : i32
    return %c0_i32, %c0_i32_0 : i32, i32
  }
  func.func @transform_2(%arg0: i32) -> (i32, i32) {
    %c0_i32 = arith.constant 0 : i32
    %c0_i32_0 = arith.constant 0 : i32
    %c0_i32_1 = arith.constant 0 : i32
    return %c0_i32, %c0_i32_0 : i32, i32
  }
  func.func @transform_3(%arg0: i32) -> (i32, i32) {
    %c0_i32 = arith.constant 0 : i32
    %c0_i32_0 = arith.constant 0 : i32
    %c0_i32_1 = arith.constant 0 : i32
    return %c0_i32, %c0_i32_0 : i32, i32
  }
  func.func @transform_4(%arg0: i32) -> (i32, i32) {
    %c0_i32 = arith.constant 0 : i32
    %c0_i32_0 = arith.constant 0 : i32
    return %arg0, %c0_i32 : i32, i32
  }
}

</mosaic_0001>

<bundles_post_ra>
// kernel: tpu_custom_call.1
= control target key start
LH: loop header
LB: loop body
LE: loop exit
PB: predicated region body
PF: predicated region fallthrough
CT: control target
= control target key end

     0   :  { %9 = vsyncpa [#allocation3], 0  ;;  %s464_s0 = inlined_call_operand.hbm [shape: f32[2,4], index: 0, kind: input, shape index: {}]   ;;  %s465_s1 = inlined_call_operand.hbm [shape: f32[4,128], index: 1, kind: input, shape index: {}]   ;;  %s466_s2 = inlined_call_operand.vmem [shape: f32[1,128], index: 2, kind: input, shape index: {}]   ;;  %s467_s3 = inlined_call_operand.vmem [shape: f32[1,128], index: 3, kind: input, shape index: {}]   ;;  %s468_s4 = inlined_call_operand.hbm [shape: f32[2,128], index: 4, kind: output, shape index: {}]  }
   0x1   :  { %10 = vsyncpa [#allocation6], 0 }
   0x2   :  { %11 = vsyncpa [#allocation4], 0  ;;  %s365_s15 = smov [#allocation2]   ;;  %s366_s17 = smov [#allocation5]  }
   0x3   :  { %s18_s16 = sshll.u32 %s365_s15, 4  ;;  %s28_s18 = sshll.u32 %s366_s17, 4  ;;  %s19_s16 = int_to_ptr.vmem [resolvable:$true] %s18_s16  ;;  %s29_s18 = int_to_ptr.vmem [resolvable:$true] %s28_s18 }
   0x4   :  { %s293_s21 = scalar_lea.hbm %s464_s0, 32 }
   0x5   :  { %p294_p0 = scmp.ne.s32.totalorder %s464_s0, %s293_s21  ;;  %p297_p1 = scmp.lt.u32.totalorder %s293_s21, %s464_s0 }
   0x7   :  { %p299_p2 = pnand %p297_p1, %p294_p0 }
   0x9   :  { %302 = shalt.err (!%p299_p2)
}
   0xa   :  { %s303_s26 = scalar_lea.vmem %s19_s16, 32  ;;  %p308_p4 = scmp.lt.s32.totalorder %s19_s16, %s19_s16 }
   0xb   :  { %p304_p3 = scmp.ne.s32.totalorder %s19_s16, %s303_s26  ;;  %p309_p5 = scmp.lt.s32.totalorder %s303_s26, %s303_s26 }
   0xd   :  { %p310_p6 = por %p309_p5, %p308_p4 }
   0xf   :  { %p311_p7 = pnand %p310_p6, %p304_p3 }
  0x11   :  { %314 = shalt.err (!%p311_p7)
}
  0x12   :  { %21 = dma.hbm_to_vmem [thread:$0]  %s464_s0, 32, %s19_s16, [#allocation3]  }
  0x13   :  { %s315_s5 = scalar_lea.hbm %s465_s1, 64 }
  0x14   :  { %p316_p8 = scmp.ne.s32.totalorder %s465_s1, %s315_s5  ;;  %p319_p9 = scmp.lt.u32.totalorder %s315_s5, %s465_s1 }
  0x16   :  { %p321_p10 = pnand %p319_p9, %p316_p8 }
  0x18   :  { %324 = shalt.err (!%p321_p10)
}
  0x19   :  { %s325_s10 = scalar_lea.vmem %s29_s18, 64  ;;  %p330_p12 = scmp.lt.s32.totalorder %s29_s18, %s29_s18 }
  0x1a   :  { %p326_p11 = scmp.ne.s32.totalorder %s29_s18, %s325_s10  ;;  %p331_p13 = scmp.lt.s32.totalorder %s325_s10, %s325_s10 }
  0x1c   :  { %p332_p0 = por %p331_p13, %p330_p12 }
  0x1e   :  { %p333_p1 = pnand %p332_p0, %p326_p11 }
  0x20   :  { %336 = shalt.err (!%p333_p1)
}
  0x21   :  { %31 = dma.hbm_to_vmem [thread:$0]  %s465_s1, 64, %s29_s18, [#allocation6]  }
  0x22   :  { %359 = dma.done.wait [#allocation3], 32  }
  0x23   :  { %360 = vsyncadd [#allocation3], 4294967264 }
  0x24   :  { %361 = dma.done.wait [#allocation6], 64  }
  0x25   :  { %362 = vsyncadd [#allocation6], 4294967232  ;;  %v367_v0 = vmov 0.0   ;;  %vm368_vm0 = vmmov 0   ;;  %vm48_vm1 = vcmask 1043456   ;;  %vm44_vm2 = vcmask 31744  }
  0x26   :  { %269 = vmatprep.subr.mxu0 %v367_v0  ;;  %271 = vmatprep.mubr.msk.f32.mxu0 %vm368_vm0, %v367_v0  ;;  %v43_v1 = vld [vmem:[#allocation5] sm:$0xf]  ;;  %v42_v2 = vld [vmem:[#allocation2] sm:$0x3]  ;;  %v369_v20 = vmov 2102212464  }
  0x27   :  { %270 = vmatpush3.msk.msra.mxu0 %vm48_vm1, %v43_v1  ;;  %v261_v3 = vld [vmem:[%s466_s2] ss:$0 sm:$0xff]  ;;  %v370_v22 = vmov 920167782   ;;  %v371_v26 = vmov 1326507024  }
  0x28   :  { %272 = vmatmul.mubr.msk.f32.vlgmr.msra.gmra.mrb[0].mxu0 %vm44_vm2, %v42_v2  ;;  %v262_v5 = vld [vmem:[%s467_s3] ss:$0 sm:$0xff]  ;;  %v372_v28 = vmov 683565275   ;;  %v373_v30 = vmov 2475754826  }
  0x29   :  { %v374_v33 = vmov 2131351028   ;;  %s375_s2 = smov [#allocation7]  }
  0x2a   :  { %s249_s3 = sshll.u32 %s375_s2, 4  ;;  %s250_s3 = int_to_ptr.vmem [resolvable:$true] %s249_s3 }
  0x2b   :  { %s337_s15 = scalar_lea.vmem %s250_s3, 32  ;;  %p342_p3 = scmp.lt.s32.totalorder %s250_s3, %s250_s3 }
  0x2c   :  { %p338_p2 = scmp.ne.s32.totalorder %s250_s3, %s337_s15  ;;  %p343_p4 = scmp.lt.s32.totalorder %s337_s15, %s337_s15 }
  0x2e   :  { %p344_p5 = por %p343_p4, %p342_p3 }
  0x30   :  { %p345_p6 = pnand %p344_p5, %p338_p2 }
  0xfb   :  { %v118_v4 = vpop.f32.mrb[0].mxu0 }
  0xfc   :  { %v129_v6 = vmul.f32 %v261_v3, %v118_v4  ;;  %v273_v7 = vpop.f32.mrb[1].mxu0 }
  0xfe   :  { %v431_v8 = vadd.f32 %v262_v5, %v129_v6 }
 0x100   :  { %v141_v9 = vand.u32 2139095040, %v431_v8  ;;  %v138_v10 = vand.u32 2147483647, %v431_v8  ;;  %vm140_vm10 = vcmp.lt.s32.totalorder %v431_v8, 0  ;;  %vm230_vm15 = vweird.f32 %v431_v8 }
 0x102   :  { %v142_v11 = vshrl.u32 %v141_v9, 23  ;;  %v145_v13 = vand.u32 8388607, %v138_v10  ;;  %vm139_vm11 = vcmp.le.f32.partialorder %v138_v10, 0.7853982 }
 0x104   :  { %v263_v12 = vadd.s32 4294967169, %v142_v11  ;;  %v146_v16 = vor.u32 8388608, %v145_v13 }
 0x106   :  { %v148_v14 = vadd.s32 1, %v263_v12  ;;  %v186_v24 = vshll.u32 %v146_v16, 8 }
 0x108   :  { %vm149_vm3 = vcmp.gt.s32.totalorder %v148_v14, 0 }
 0x109   :  { %v150_v15 = vsel %vm149_vm3, %v148_v14, 0 }
 0x10a   :  { %v152_v17 = vand.u32 31, %v150_v15  ;;  %v151_v18 = vshrl.u32 %v150_v15, 5 }
 0x10c   :  { %v153_v19 = vsub.s32 32, %v152_v17  ;;  %v164_v21 = vshll.u32 %v369_v20, %v152_v17  ;;  %v167_v23 = vshll.u32 %v370_v22, %v152_v17  ;;  %v155_v29 = vshll.u32 %v372_v28, %v152_v17 }
 0x10d   :  { %v158_v32 = vshll.u32 %v373_v30, %v152_v17  ;;  %v161_v35 = vshll.u32 %v374_v33, %v152_v17  ;;  %vm173_vm4 = vcmp.lt.s32.totalorder %v151_v18, 4  ;;  %vm170_vm5 = vcmp.lt.s32.totalorder %v151_v18, 1 }
 0x10e   :  { %v165_v25 = vshrl.u32 %v370_v22, %v153_v19  ;;  %v168_v27 = vshrl.u32 %v371_v26, %v153_v19  ;;  %v156_v31 = vshrl.u32 %v373_v30, %v153_v19  ;;  %v159_v34 = vshrl.u32 %v374_v33, %v153_v19 }
 0x10f   :  { %v162_v36 = vshrl.u32 %v369_v20, %v153_v19  ;;  %v154_v40 = vshrl.u32 %v372_v28, %v153_v19  ;;  %vm171_vm6 = vcmp.lt.s32.totalorder %v151_v18, 2  ;;  %vm172_vm7 = vcmp.lt.s32.totalorder %v151_v18, 3 }
 0x110   :  { %v166_v37 = vor.u32 %v165_v25, %v164_v21  ;;  %v169_v38 = vor.u32 %v168_v27, %v167_v23  ;;  %v157_v39 = vor.u32 %v156_v31, %v155_v29  ;;  %v160_v41 = vor.u32 %v159_v34, %v158_v32 }
 0x111   :  { %v163_v42 = vor.u32 %v162_v36, %v161_v35 }
 0x112   :  { %v179_v43 = vsel %vm173_vm4, %v166_v37, 920167782  ;;  %v183_v44 = vsel %vm173_vm4, %v169_v38, 1326507024  ;;  %v178_v46 = vsel %vm170_vm5, %v157_v39, %v160_v41  ;;  %v174_v49 = vsel %vm170_vm5, %v154_v40, %v157_v39 }
 0x113   :  { %v175_v45 = vsel %vm173_vm4, %v163_v42, 2102212464  ;;  %v180_v47 = vsel %vm172_vm7, %v163_v42, %v179_v43  ;;  %v182_v48 = vsel %vm170_vm5, %v160_v41, %v163_v42  ;;  %v184_v52 = vsel %vm172_vm7, %v166_v37, %v183_v44 }
 0x114   :  { %v176_v50 = vsel %vm172_vm7, %v160_v41, %v175_v45  ;;  %v181_v51 = vsel %vm171_vm6, %v178_v46, %v180_v47  ;;  %v185_v53 = vsel %vm171_vm6, %v182_v48, %v184_v52 }
 0x115   :  { %v437_v54 = vmul.u32.u64.low %v186_v24, %v181_v51  ;;  %v438_v55 = vmul.u32.u64.high %v186_v24, %v181_v51, %v437_v54  ;;  %v440_v56 = vmul.u32.u64.low %v186_v24, %v185_v53  ;;  %v441_v57 = vmul.u32.u64.high %v186_v24, %v185_v53, %v440_v56 }
 0x116   :  { %v177_v58 = vsel %vm171_vm6, %v174_v49, %v176_v50 }
 0x117   :  { %v196_v59 = vadd.s32 1, %v438_v55  ;;  %v193_v60 = vmul.u32 %v186_v24, %v177_v58  ;;  %vm195_vm8 = vc.u32 %v441_v57, %v437_v54  ;;  %v194_v9 = vadd.s32 %v437_v54, %v441_v57 }
 0x119   :  { %v197_v61 = vsel %vm195_vm8, %v196_v59, %v438_v55 }
 0x11a   :  { %v198_v62 = vadd.s32 %v197_v61, %v193_v60 }
 0x11c   :  { %v199_v63 = vadd.s32 536870912, %v198_v62 }
 0x11e   :  { %v200_v0 = vshrl.u32 %v199_v63, 30 }
 0x120   :  { %v201_v1 = vshll.u32 %v200_v0, 30  ;;  %v224_v22 = vsub.s32 4, %v200_v0 }
 0x122   :  { %v202_v2 = vsub.s32 %v198_v62, %v201_v1  ;;  %v225_v25 = vsel %vm140_vm10, %v224_v22, %v200_v0 }
 0x123   :  { %v227_v27 = vsel %vm139_vm11, 0, %v225_v25 }
 0x124   :  { %v204_v3 = vsub.s32 0, %v202_v2  ;;  %v231_v28 = vadd.s32 3, %v227_v27 }
 0x126   :  { %v264_v4 = vmin.u32 %v204_v3, %v202_v2  ;;  %v232_v29 = vand.u32 3, %v231_v28 }
 0x128   :  { %v206_v5 = vclz %v264_v4  ;;  %vm237_vm12 = vcmp.eq.s32.totalorder %v232_v29, 2  ;;  %vm234_vm13 = vcmp.eq.s32.totalorder %v232_v29, 0  ;;  %vm233_vm14 = vcmp.lt.s32.totalorder %v232_v29, 2 }
 0x12a   :  { %v265_v6 = vadd.s32 4294967294, %v206_v5 }
 0x12c   :  { %vm266_vm9 = vcmp.lt.s32.totalorder %v265_v6, 0 }
 0x12d   :  { %v209_v7 = vsel %vm266_vm9, 0, %v265_v6 }
 0x12e   :  { %v210_v11 = vsub.s32 32, %v209_v7  ;;  %v214_v12 = vsub.s32 4294967266, %v209_v7  ;;  %v211_v13 = vshll.u32 %v202_v2, %v209_v7 }
 0x130   :  { %v212_v14 = vshrl.u32 %v194_v9, %v210_v11  ;;  %v215_v15 = vadd.s32 127, %v214_v12 }
 0x132   :  { %v213_v16 = vor.u32 %v212_v14, %v211_v13  ;;  %v216_v17 = vshll.u32 %v215_v15, 23 }
 0x134   :  { %v217_v18 = vor.u32 4788187, %v216_v17  ;;  %v220_v20 = vcvt.s32.f32 %v213_v16 }
 0x136   :  { %v218_v19 = vand.u32 2147483647, %v217_v18 }
 0x138   :  { %v221_v21 = vmul.f32 %v220_v20, %v218_v19 }
 0x13a   :  { %v222_v23 = vxor.u32 2147483648, %v221_v21 }
 0x13c   :  { %v223_v24 = vsel %vm140_vm10, %v222_v23, %v221_v21 }
 0x13d   :  { %v226_v26 = vsel %vm139_vm11, %v431_v8, %v223_v24 }
 0x13e   :  { %289 = vcosq.f32 %v226_v26 }
 0x13f   :  { %291 = vsinq.f32 %v226_v26 }
 0x148   :  { %v290_v30 = vpop.eup %289 }
 0x149   :  { %v292_v31 = vpop.eup %291  ;;  %v238_v32 = vxor.u32 2147483648, %v290_v30 }
 0x14a   :  { %v235_v33 = vxor.u32 2147483648, %v292_v31 }
 0x14b   :  { %v239_v34 = vsel %vm237_vm12, %v238_v32, %v292_v31 }
 0x14c   :  { %v236_v10 = vsel %vm234_vm13, %v290_v30, %v235_v33 }
 0x14d   :  { %v240_v35 = vsel %vm233_vm14, %v236_v10, %v239_v34 }
 0x14e   :  { %v241_v36 = vsel %vm230_vm15, nan, %v240_v35 }
 0x14f   :  { %242 = vst [vmem:[#allocation7] sm:$0x3] %v241_v36 }
 0x150   :  { %348 = shalt.err (!%p345_p6)
}
 0x151   :  { %s349_s18 = scalar_lea.hbm %s468_s4, 32 }
 0x152   :  { %p350_p7 = scmp.ne.s32.totalorder %s468_s4, %s349_s18  ;;  %p353_p8 = scmp.lt.u32.totalorder %s349_s18, %s468_s4 }
 0x154   :  { %p355_p9 = pnand %p353_p8, %p350_p7 }
 0x156   :  { %358 = shalt.err (!%p355_p9)
}
 0x157   :  { %252 = dma.vmem_to_hbm [thread:$0]  %s250_s3, 32, %s468_s4, [#allocation4]  }
 0x158   :  { %363 = dma.done.wait [#allocation4], 32  }
 0x159   :  { %364 = vsyncadd [#allocation4], 4294967264 }
 0x15a   :  { %256 = vsyncpa [#allocation3], 1 }
 0x15b   :  { %257 = vsyncpa [#allocation6], 1 }
 0x15c   :  { %258 = vsyncpa [#allocation4], 1 }

</bundles_post_ra>
